<compile_context>
chip_gen: v7x
topology: tpu7x:2x2x1
jax: 0.10.0
libtpu: 0.0.40
codegen_flags: <defaults>
</compile_context>

<pallas_src>
import jax
import jax.numpy as jnp
from jax import lax
from jax.experimental import pallas as pl
from jax.experimental.pallas import tpu as pltpu


def _rope_kernel(cos2_ref, sins_ref, q_ref, k_ref, qo_ref, ko_ref):
    # cos2_ref / sins_ref: [TS, D] f32 tables (cos repeated per pair; sin with
    # alternating -/+ sign per lane).  q/k/out refs: [TS, D] (batch dim squeezed).
    cos2 = cos2_ref[...]
    sins = sins_ref[...]
    D = cos2.shape[-1]

    lane = lax.broadcasted_iota(jnp.int32, cos2.shape, dimension=1)
    is_even = (lane & 1) == 0

    def rotate(x_ref, o_ref):
        x = x_ref[...].astype(jnp.float32)
        # Within-pair swap: even lane 2i needs x[2i+1], odd lane 2i+1 needs x[2i].
        # pltpu.roll follows jnp.roll semantics: roll(x, s)[j] = x[(j - s) % D].
        partner = jnp.where(is_even,
                            pltpu.roll(x, D - 1, axis=1),   # x[j+1] for even lanes
                            pltpu.roll(x, 1, axis=1))       # x[j-1] for odd lanes
        o_ref[...] = (x * cos2 + partner * sins).astype(o_ref.dtype)

    rotate(q_ref, qo_ref)
    rotate(k_ref, ko_ref)


def _pick_block_seq(S, D, itemsize):
    """Largest divisor of S (multiple of 8/16) giving ~1 MiB tiles."""
    cap = max(8, (1024 * 1024) // max(1, D * itemsize))
    step = 16 if itemsize < 4 else 8          # bf16 needs sublane multiples of 16
    if S <= cap or S % step != 0:
        return S
    best = step
    ts = step
    while ts <= cap:
        if S % ts == 0:
            best = ts
        ts += step
    return best


def rotary_embedding(q, k, positions=None, *, base=10000, block_seq=None):
    """q, k: [B, S, dim//2, 2].  Returns (q_embed, k_embed), same shape/dtype."""
    B, S, D2, two = q.shape
    assert two == 2 and k.shape == q.shape
    D = 2 * D2

    # Buffer from the module's __init__ (deterministic, no checkpoint needed).
    inv_freq = 1.0 / (base ** (jnp.arange(0, D, 2, dtype=jnp.float32) / D))

    if positions is None:
        positions = jnp.arange(S)
    # Angles in f32 (bf16 positions lose integer precision past ~256).
    ang = positions.astype(jnp.float32)[:, None] * inv_freq[None, :]      # [S, D2]
    cos2 = jnp.repeat(jnp.cos(ang), 2, axis=-1)                           # [c0,c0,c1,c1,...]
    sin = jnp.sin(ang)
    sin_signed = jnp.stack([-sin, sin], axis=-1).reshape(S, D)            # [-s0,+s0,-s1,+s1,...]

    if block_seq is None:
        block_seq = _pick_block_seq(S, D, jnp.dtype(q.dtype).itemsize)
    assert S % block_seq == 0, "block_seq must divide S"
    TS = block_seq

    # Free contiguous views (merge of trailing dims -> no data movement).
    q2 = q.reshape(B, S, D)
    k2 = k.reshape(B, S, D)

    tbl_spec = pl.BlockSpec((TS, D), lambda b, s: (s, 0))
    qk_spec = pl.BlockSpec((None, TS, D), lambda b, s: (b, s, 0))

    qo, ko = pl.pallas_call(
        _rope_kernel,
        out_shape=(jax.ShapeDtypeStruct((B, S, D), q.dtype),
                   jax.ShapeDtypeStruct((B, S, D), k.dtype)),
        grid=(B, S // TS),
        in_specs=[tbl_spec, tbl_spec, qk_spec, qk_spec],
        out_specs=(qk_spec, qk_spec),
        compiler_params=pltpu.CompilerParams(
            dimension_semantics=("parallel", "parallel")),
    )(cos2, sin_signed, q2, k2)

    return qo.reshape(B, S, D2, 2), ko.reshape(B, S, D2, 2)


def _reference(q, k, positions, base=10000):
    """Pure-JAX transcription of the PyTorch forward (for verification)."""
    B, S, D2, _ = q.shape
    dim = 2 * D2
    inv_freq = 1.0 / (base ** (jnp.arange(0, dim, 2, dtype=jnp.float32) / dim))
    angle = positions.astype(jnp.float32)[:, None] * inv_freq              # [S, D2]
    sincos = jnp.stack([jnp.sin(angle), jnp.cos(angle)], axis=-1)          # [S, D2, 2]
    sincos = jnp.broadcast_to(sincos[None], (B, S, D2, 2))
    sin, cos = sincos[..., 0:1], sincos[..., 1:2]                          # [B,S,D2,1]

    def rotate_half(x):
        x1, x2 = x[..., ::2], x[..., 1::2]
        return jnp.concatenate([-x2, x1], axis=-1)

    q_embed = q * cos + rotate_half(q) * sin
    k_embed = k * cos + rotate_half(k) * sin
    return q_embed, k_embed


if __name__ == "__main__":
    B, S, dim = 2, 256, 128        # lane-dense dim (multiple of 128)
    D2 = dim // 2

    key = jax.random.PRNGKey(0)
    kq, kk = jax.random.split(key)
    q = jax.random.normal(kq, (B, S, D2, 2), dtype=jnp.float32)
    k = jax.random.normal(kk, (B, S, D2, 2), dtype=jnp.float32)

    q_ref, k_ref = _reference(q, k, jnp.arange(S))

    # Explicit seq tiling (grid = (B, S//64)).
    q_out, k_out = rotary_embedding(q, k, block_seq=64)
    q_out = jax.block_until_ready(q_out)
    k_out = jax.block_until_ready(k_out)
    assert q_out.shape == q.shape and q_out.dtype == q.dtype
    assert k_out.shape == k.shape and k_out.dtype == k.dtype
    assert jnp.allclose(q_out, q_ref, atol=1e-5, rtol=1e-5)
    assert jnp.allclose(k_out, k_ref, atol=1e-5, rtol=1e-5)

    # Auto-picked tile size path.
    q_out2, k_out2 = rotary_embedding(q, k)
    q_out2 = jax.block_until_ready(q_out2)
    k_out2 = jax.block_until_ready(k_out2)
    assert jnp.allclose(q_out2, q_ref, atol=1e-5, rtol=1e-5)
    assert jnp.allclose(k_out2, k_ref, atol=1e-5, rtol=1e-5)

    print("KERNEL_OK")
</pallas_src>

<mosaic_0001>
module attributes {stable_mosaic.version = 11 : i64} {
  func.func @_rope_kernel(%arg0: i32, %arg1: i32, %arg2: memref<64x128xf32, #tpu.memory_space<vmem>>, %arg3: memref<64x128xf32, #tpu.memory_space<vmem>>, %arg4: memref<1x64x128xf32, #tpu.memory_space<vmem>>, %arg5: memref<1x64x128xf32, #tpu.memory_space<vmem>>, %arg6: memref<1x64x128xf32, #tpu.memory_space<vmem>>, %arg7: memref<1x64x128xf32, #tpu.memory_space<vmem>>) attributes {dimension_semantics = [#tpu.dimension_semantics<parallel>, #tpu.dimension_semantics<parallel>], iteration_bounds = array<i64: 2, 4>, scalar_prefetch = 0 : i64, scratch_operands = 0 : i64, tpu.core_type = #tpu.core_type<tc>, window_params = [{transform_indices = @transform_0, window_bounds = array<i64: 64, 128>}, {transform_indices = @transform_1, window_bounds = array<i64: 64, 128>}, {transform_indices = @transform_2, window_bounds = array<i64: 1, 64, 128>}, {transform_indices = @transform_3, window_bounds = array<i64: 1, 64, 128>}, {transform_indices = @transform_4, window_bounds = array<i64: 1, 64, 128>}, {transform_indices = @transform_5, window_bounds = array<i64: 1, 64, 128>}]} {
    %c0 = arith.constant 0 : index
    %c0_0 = arith.constant 0 : index
    %0 = vector.load %arg2[%c0, %c0_0] : memref<64x128xf32, #tpu.memory_space<vmem>>, vector<64x128xf32>
    %c0_1 = arith.constant 0 : index
    %c0_2 = arith.constant 0 : index
    %1 = vector.load %arg3[%c0_1, %c0_2] : memref<64x128xf32, #tpu.memory_space<vmem>>, vector<64x128xf32>
    %2 = tpu.iota {dimensions = array<i32: 1>} : vector<64x128xi32>
    %c1_i32 = arith.constant 1 : i32
    %3 = vector.broadcast %c1_i32 : i32 to vector<64x128xi32>
    %4 = arith.andi %2, %3 : vector<64x128xi32>
    %c0_i32 = arith.constant 0 : i32
    %5 = vector.broadcast %c0_i32 : i32 to vector<64x128xi32>
    %6 = arith.cmpi eq, %4, %5 : vector<64x128xi32>
    %c0_3 = arith.constant 0 : index
    %c0_4 = arith.constant 0 : index
    %c0_5 = arith.constant 0 : index
    %7 = vector.load %arg4[%c0_3, %c0_4, %c0_5] : memref<1x64x128xf32, #tpu.memory_space<vmem>>, vector<1x64x128xf32>
    %8 = vector.shape_cast %7 : vector<1x64x128xf32> to vector<64x128xf32>
    %c127_i32 = arith.constant 127 : i32
    %9 = tpu.dynamic_rotate %8 by %c127_i32 dim 1 : vector<64x128xf32>, i32 -> vector<64x128xf32>
    %c1_i32_6 = arith.constant 1 : i32
    %10 = tpu.dynamic_rotate %8 by %c1_i32_6 dim 1 : vector<64x128xf32>, i32 -> vector<64x128xf32>
    %11 = arith.select %6, %9, %10 : vector<64x128xi1>, vector<64x128xf32>
    %12 = arith.mulf %8, %0 : vector<64x128xf32>
    %13 = arith.mulf %11, %1 : vector<64x128xf32>
    %14 = arith.addf %12, %13 : vector<64x128xf32>
    %c0_7 = arith.constant 0 : index
    %c0_8 = arith.constant 0 : index
    %c0_9 = arith.constant 0 : index
    %15 = vector.load %arg6[%c0_7, %c0_8, %c0_9] : memref<1x64x128xf32, #tpu.memory_space<vmem>>, vector<1x64x128xf32>
    %16 = vector.shape_cast %15 : vector<1x64x128xf32> to vector<64x128xf32>
    %17 = vector.shape_cast %14 : vector<64x128xf32> to vector<1x64x128xf32>
    tpu.vector_store %arg6[%c0_7, %c0_8, %c0_9], %17 {strides = array<i32>} : memref<1x64x128xf32, #tpu.memory_space<vmem>>, vector<1x64x128xf32>,
    %c0_10 = arith.constant 0 : index
    %c0_11 = arith.constant 0 : index
    %c0_12 = arith.constant 0 : index
    %18 = vector.load %arg5[%c0_10, %c0_11, %c0_12] : memref<1x64x128xf32, #tpu.memory_space<vmem>>, vector<1x64x128xf32>
    %19 = vector.shape_cast %18 : vector<1x64x128xf32> to vector<64x128xf32>
    %c127_i32_13 = arith.constant 127 : i32
    %20 = tpu.dynamic_rotate %19 by %c127_i32_13 dim 1 : vector<64x128xf32>, i32 -> vector<64x128xf32>
    %c1_i32_14 = arith.constant 1 : i32
    %21 = tpu.dynamic_rotate %19 by %c1_i32_14 dim 1 : vector<64x128xf32>, i32 -> vector<64x128xf32>
    %22 = arith.select %6, %20, %21 : vector<64x128xi1>, vector<64x128xf32>
    %23 = arith.mulf %19, %0 : vector<64x128xf32>
    %24 = arith.mulf %22, %1 : vector<64x128xf32>
    %25 = arith.addf %23, %24 : vector<64x128xf32>
    %c0_15 = arith.constant 0 : index
    %c0_16 = arith.constant 0 : index
    %c0_17 = arith.constant 0 : index
    %26 = vector.load %arg7[%c0_15, %c0_16, %c0_17] : memref<1x64x128xf32, #tpu.memory_space<vmem>>, vector<1x64x128xf32>
    %27 = vector.shape_cast %26 : vector<1x64x128xf32> to vector<64x128xf32>
    %28 = vector.shape_cast %25 : vector<64x128xf32> to vector<1x64x128xf32>
    tpu.vector_store %arg7[%c0_15, %c0_16, %c0_17], %28 {strides = array<i32>} : memref<1x64x128xf32, #tpu.memory_space<vmem>>, vector<1x64x128xf32>,
    return
  }
  func.func @transform_0(%arg0: i32, %arg1: i32) -> (i32, i32) {
    %c0_i32 = arith.constant 0 : i32
    %c0_i32_0 = arith.constant 0 : i32
    return %arg1, %c0_i32 : i32, i32
  }
  func.func @transform_1(%arg0: i32, %arg1: i32) -> (i32, i32) {
    %c0_i32 = arith.constant 0 : i32
    %c0_i32_0 = arith.constant 0 : i32
    return %arg1, %c0_i32 : i32, i32
  }
  func.func @transform_2(%arg0: i32, %arg1: i32) -> (i32, i32, i32) {
    %c0_i32 = arith.constant 0 : i32
    %c0_i32_0 = arith.constant 0 : i32
    return %arg0, %arg1, %c0_i32 : i32, i32, i32
  }
  func.func @transform_3(%arg0: i32, %arg1: i32) -> (i32, i32, i32) {
    %c0_i32 = arith.constant 0 : i32
    %c0_i32_0 = arith.constant 0 : i32
    return %arg0, %arg1, %c0_i32 : i32, i32, i32
  }
  func.func @transform_4(%arg0: i32, %arg1: i32) -> (i32, i32, i32) {
    %c0_i32 = arith.constant 0 : i32
    %c0_i32_0 = arith.constant 0 : i32
    return %arg0, %arg1, %c0_i32 : i32, i32, i32
  }
  func.func @transform_5(%arg0: i32, %arg1: i32) -> (i32, i32, i32) {
    %c0_i32 = arith.constant 0 : i32
    %c0_i32_0 = arith.constant 0 : i32
    return %arg0, %arg1, %c0_i32 : i32, i32, i32
  }
}

</mosaic_0001>

<bundles_post_ra>
// kernel: tpu_custom_call.1
= control target key start
LH: loop header
LB: loop body
LE: loop exit
PB: predicated region body
PF: predicated region fallthrough
CT: control target
= control target key end

     0   :  { %s2047_s0 = inlined_call_operand.hbm [shape: f32[256,128], index: 0, kind: input, shape index: {}]   ;;  %s2048_s1 = inlined_call_operand.hbm [shape: f32[256,128], index: 1, kind: input, shape index: {}]   ;;  %s2049_s2 = inlined_call_operand.hbm [shape: f32[2,256,128], index: 2, kind: input, shape index: {}]   ;;  %s2050_s3 = inlined_call_operand.hbm [shape: f32[2,256,128], index: 3, kind: input, shape index: {}]   ;;  %s2051_s4 = inlined_call_operand.hbm [shape: f32[2,256,128], index: 4, kind: output, shape index: {0}]   ;;  %s2052_s5 = inlined_call_operand.hbm [shape: f32[2,256,128], index: 5, kind: output, shape index: {1}]  }
   0x1   :  { %2072 = sst [smem:[#allocation26_spill]] %s2047_s0 }
   0x2   :  { %2073 = sst [smem:[#allocation27_spill]] %s2048_s1 }
   0x3   :  { %2074 = sst [smem:[#allocation28_spill]] %s2049_s2 }
   0x4   :  { %2075 = sst [smem:[#allocation29_spill]] %s2051_s4 }
   0x5   :  { %2076 = sst [smem:[#allocation30_spill]] %s2052_s5 }
   0x6   :  { %11 = vsyncpa [#allocation3], 0 }
   0x7   :  { %13 = vsyncpa [#allocation3 + $0x1], 0 }
   0x8   :  { %14 = vsyncpa [#allocation6], 0 }
   0x9   :  { %16 = vsyncpa [#allocation6 + $0x1], 0 }
   0xa   :  { %17 = vsyncpa [#allocation9], 0 }
   0xb   :  { %19 = vsyncpa [#allocation9 + $0x1], 0 }
   0xc   :  { %20 = vsyncpa [#allocation4], 0 }
   0xd   :  { %22 = vsyncpa [#allocation4 + $0x1], 0 }
   0xe   :  { %23 = vsyncpa [#allocation12], 0 }
   0xf   :  { %25 = vsyncpa [#allocation12 + $0x1], 0  ;;  %s1309_s18 = smov 0   ;;  %s1311_s19 = smov 0  }
  0x10   :  { %s1313_s20 = smov 0   ;;  %s1315_s21 = smov 0  }
  0x11   :  { %s1317_s22 = smov 0   ;;  %s1319_s23 = smov 0  }
  0x12   :  { %s1321_s24 = smov 0   ;;  %s1323_s25 = smov 0  }
  0x13   :  { %s1325_s26 = smov 0   ;;  %s1327_s27 = smov 0  }
  0x14   :  { %s1329_s28 = smov 0  }
  0x15 LB: > { %2077 = sst [smem:[#allocation19_spill]] %s1225_s18  ;;  %s1363_s29 = sadd.s32 4294967295, %s1265_s28   ;;  %s1265_s28 = sphi %s1329_s28, %s31_s28   ;;  %s1261_s27 = sphi %s1327_s27, %s2129_s27   ;;  %s1257_s26 = sphi %s1325_s26, %s2128_s26   ;;  %s1253_s25 = sphi %s1323_s25, %s2127_s25   ;;  %s1249_s24 = sphi %s1321_s24, %s2126_s24   ;;  %s1245_s23 = sphi %s1319_s23, %s2119_s23   ;;  %s1241_s22 = sphi %s1317_s22, %s2125_s22   ;;  %s1237_s21 = sphi %s1315_s21, %s2124_s21   ;;  %s1233_s20 = sphi %s1313_s20, %s2123_s20   ;;  %s1229_s19 = sphi %s1311_s19, %s2122_s19   ;;  %s1225_s18 = sphi %s1309_s18, %s2121_s18  }
  0x16   : > { %2078 = sst [smem:[#allocation20_spill]] %s1245_s23  ;;  %s40_s30 = sadd.s32 1, %s1257_s26 }
  0x17   : > { %2079 = sst [smem:[#allocation21_spill]] %s1249_s24  ;;  %p1366_p0 = scmp.ge.s32.totalorder %s40_s30, 4 }
  0x18   : > { %2080 = sst [smem:[#allocation22_spill]] %s1253_s25  ;;  %s50_s7 = sadd.s32 1, %s1245_s23 }
  0x19   : > { %p57_p1 = scmp.ne.s32.totalorder %s1245_s23, %s1241_s22  ;;  %p2060_p2 = scmp.eq.s32.totalorder %s1265_s28, 0 }
  0x1a   : > { %s2131_s30 = smov (%p1366_p0, %s40_s30), 0  ;;  %p63_p4 = scmp.ne.s32.totalorder %s1241_s22, %s1237_s21 }
  0x1b   : > { %2082 = sst [smem:[#allocation23_spill]] %s2131_s30  ;;  %p59_p3 = por %p2060_p2, %p57_p1 }
  0x1c   : > { %s1383_s8 = ssub.s32 %s1257_s26, %s2131_s30  ;;  %p2059_p5 = scmp.eq.s32.totalorder %s1363_s29, 0 }
  0x1d   : > { %p48_p6 = scmp.eq.s32.totalorder %s1383_s8, 0  ;;  %p2058_p8 = scmp.lt.s32.totalorder %s1265_s28, 8 }
  0x1e   : > { %p1389_p7 = por %p2059_p5, %p63_p4  ;;  %s2053_s11 = sand.u32 1, %s1245_s23  }
  0x1f   : > { %s1395_s10 = scalar_select %p48_p6, %s1245_s23, %s50_s7  }
  0x20   : > { %s2083_s9 = scalar_select %p1389_p7, 1, 0 }
  0x21   : > { %2084 = sst [smem:[#allocation24_spill]] %s1395_s10  ;;  %s2055_s12 = sshll.u32 %s1257_s26, 10 }
  0x22   : > { %s1401_s13 = sshll.u32 %s2053_s11, 6  ;;  %p1405_p9 = pnand %p2058_p8, %p59_p3 }
  0x23   : > { %s246_s15 = sand.u32 1, %s1265_s28   ;;  %s2086_s1 = sld [smem:[#allocation27_spill]] }
  0x24   : > { %s250_s7 = scalar_lea.vmem [#allocation5], %s1401_s13  ;;  %s1421_s30 = scalar_lea.sflag [#allocation6], %s246_s15 }
  0x25   : > { %s257_s11 = sshll.u32 %s250_s7, 4  ;;  %p981_p12 = pneg %p1405_p9  ;;  %s1418_s11 = int_to_ptr.vmem [resolvable:$true] %s257_s11 }
  0x29   : > { %s1415_s21 = scalar_lea.hbm %s2086_s1, %s2055_s12  ;;  %s984_s12 = scalar_lea.hbm %s2086_s1, 4096 }
  0x2a   : > { %s979_s10 = scalar_lea.hbm %s1415_s21, 1024  ;;  %p985_p3 = scmp.lt.u32.totalorder %s1415_s21, %s2086_s1 }
  0x2b   : > { %p980_p11 = scmp.ne.s32.totalorder %s1415_s21, %s979_s10  ;;  %p986_p4 = scmp.lt.u32.totalorder %s984_s12, %s979_s10 }
  0x2c   : > { %p988_p8 = scmp.lt.u32.totalorder %s979_s10, %s1415_s21 }
  0x2d   : > { %p982_p13 = pnand %p981_p12, %p980_p11  ;;  %p987_p6 = por %p986_p4, %p985_p3 }
  0x2f   : > { %p983_p1 = pneg %p982_p13  ;;  %p989_p5 = por %p988_p8, %p987_p6 }
  0x31   : > { %p990_p2 = pnand %p989_p5, %p983_p1 }
  0x33   : > { %993 = shalt.err (!%p990_p2)
}
  0x34   : > { %s994_s15 = scalar_lea.vmem %s1418_s11, 1024  ;;  %s1267_s7 = smov [#allocation5]  }
  0x35   : > { %p995_p11 = scmp.ne.s32.totalorder %s1418_s11, %s994_s15  ;;  %s999_s16 = sshll.u32 %s1267_s7, 4  ;;  %s1000_s16 = int_to_ptr.vmem [resolvable:$false] %s999_s16 }
  0x36   : > { %s1001_s4 = scalar_lea.vmem %s1000_s16, 2048  ;;  %p1002_p7 = scmp.lt.s32.totalorder %s1418_s11, %s1000_s16 }
  0x37   : > { %p997_p13 = pnand %p995_p11, %p981_p12  ;;  %p1003_p3 = scmp.lt.s32.totalorder %s1001_s4, %s994_s15 }
  0x39   : > { %p998_p10 = pneg %p997_p13  ;;  %p1004_p4 = por %p1003_p3, %p1002_p7 }
  0x3b   : > { %p1005_p8 = pnand %p1004_p4, %p998_p10 }
  0x3d   : > { %1008 = shalt.err (!%p1005_p8)
}
  0x3e   : > { %s2062_s5 = smov 128   ;;  %s2064_s10 = smov 8  }
  0x3f   : > { %869 = dma.hbm_to_vmem [thread:$0]  (!%p1405_p9), %s1415_s21, 1024, %s1418_s11, %s1421_s30, %s2062_s5, %s2062_s5, %s2064_s10  }
  0x40   : > { %p311_p2 = scmp.lt.s32.totalorder %s1265_s28, 9  ;;  %p2087_p5 = scmp.ge.s32.totalorder %s1265_s28, 1 }
  0x41   : > { %s2089_s17 = sshll.u32 %s1257_s26, 10  ;;  %s2090_s0 = sld [smem:[#allocation26_spill]] }
  0x42   : > { %p1455_p7 = pnand %p2087_p5, %p311_p2  ;;  %s229_s4 = scalar_lea.vmem [#allocation2], %s1401_s13 }
  0x43   : > { %s236_s1 = sshll.u32 %s229_s4, 4  ;;  %s2091_s11 = sand.u32 1, %s1245_s23   ;;  %s1467_s1 = int_to_ptr.vmem [resolvable:$true] %s236_s1 }
  0x44   : > { %s2088_s12 = scalar_select %p1455_p7, 1, 0 }
  0x45   : > { %s1471_s21 = scalar_lea.sflag [#allocation3], %s2091_s11 }
  0x47   : > { %s1464_s16 = scalar_lea.hbm %s2090_s0, %s2089_s17  ;;  %s1014_s7 = scalar_lea.hbm %s2090_s0, 4096 }
  0x48   : > { %s1009_s5 = scalar_lea.hbm %s1464_s16, 1024  ;;  %p1015_p11 = scmp.lt.u32.totalorder %s1464_s16, %s2090_s0 }
  0x49   : > { %p1010_p10 = scmp.ne.s32.totalorder %s1464_s16, %s1009_s5  ;;  %p1016_p13 = scmp.lt.u32.totalorder %s1014_s7, %s1009_s5 }
  0x4a   : > { %p1018_p4 = scmp.lt.u32.totalorder %s1009_s5, %s1464_s16 }
  0x4b   : > { %p1012_p1 = pnand %p1010_p10, %p981_p12  ;;  %p1017_p3 = por %p1016_p13, %p1015_p11 }
  0x4d   : > { %p1013_p6 = pneg %p1012_p1  ;;  %p1019_p8 = por %p1018_p4, %p1017_p3 }
  0x4f   : > { %p1020_p2 = pnand %p1019_p8, %p1013_p6 }
  0x51   : > { %1023 = shalt.err (!%p1020_p2)
}
  0x52   : > { %s1024_s13 = scalar_lea.vmem %s1467_s1, 1024  ;;  %s1270_s4 = smov [#allocation2]  }
  0x53   : > { %p1025_p5 = scmp.ne.s32.totalorder %s1467_s1, %s1024_s13  ;;  %s1029_s11 = sshll.u32 %s1270_s4, 4  ;;  %s1030_s11 = int_to_ptr.vmem [resolvable:$false] %s1029_s11 }
  0x54   : > { %s1031_s25 = scalar_lea.vmem %s1030_s11, 2048  ;;  %p1032_p7 = scmp.lt.s32.totalorder %s1467_s1, %s1030_s11 }
  0x55   : > { %p1027_p10 = pnand %p1025_p5, %p981_p12  ;;  %p1033_p11 = scmp.lt.s32.totalorder %s1031_s25, %s1024_s13 }
  0x57   : > { %p1028_p1 = pneg %p1027_p10  ;;  %p1034_p13 = por %p1033_p11, %p1032_p7 }
  0x59   : > { %p1035_p3 = pnand %p1034_p13, %p1028_p1 }
  0x5b   : > { %1038 = shalt.err (!%p1035_p3)
}
  0x5c   : > { %s2092_s5 = smov 8   ;;  %s2093_s10 = smov 128  }
  0x5d   : > { %866 = dma.hbm_to_vmem [thread:$0]  (!%p1405_p9), %s1464_s16, 1024, %s1467_s1, %s1471_s21, %s2093_s10, %s2093_s10, %s2092_s5  }
  0x5e   : > { %s815_s14 = sadd.s32 4294967294, %s1265_s28   ;;  %s43_s15 = sadd.s32 1, %s1261_s27 }
  0x5f   : > { %s104_s17 = sadd.s32 1, %s1233_s20  ;;  %s2133_s15 = smov (!%p1366_p0, %s43_s15), %s1261_s27 }
  0x60   : > { %p111_p12 = scmp.ne.s32.totalorder %s1233_s20, %s1229_s19  ;;  %p117_p7 = scmp.ne.s32.totalorder %s1229_s19, %s1225_s18 }
  0x61   : > { %p45_p6 = scmp.ge.s32.totalorder %s2133_s15, 2  ;;  %p171_p4 = scmp.eq.s32.totalorder %s1363_s29, 7 }
  0x62   : > { %p2094_p8 = scmp.eq.s32.totalorder %s1265_s28, 0  ;;  %p2096_p9 = scmp.eq.s32.totalorder %s1363_s29, 0 }
  0x63   : > { %s2135_s15 = smov (%p45_p6, %s2133_s15), 0  ;;  %p1525_p0 = por %p171_p4, %p111_p12 }
  0x64   : > { %p1513_p2 = por %p111_p12, %p2094_p8  ;;  %p1519_p5 = por %p117_p7, %p2096_p9 }
  0x65   : > { %s2098_s6 = scalar_select %p1525_p0, 1, 0 }
  0x66   : > { %p177_p10 = scmp.eq.s32.totalorder %s815_s14, 7  ;;  %s99_s16 = ssub.s32 %s1261_s27, %s2135_s15 }
  0x67   : > { %2099 = sst [smem:[#allocation25_spill]] %s2098_s6  ;;  %s2070_s21 = sand.u32 1, %s1233_s20  }
  0x68   : > { %s101_s13 = sor.u32 %s99_s16, %s1383_s8  ;;  %p1533_p1 = por %p177_p10, %p117_p7 }
  0x69   : > { %p102_p11 = scmp.eq.s32.totalorder %s101_s13, 0  ;;  %s1539_s11 = sshll.u32 %s2070_s21, 6 }
  0x6a   : > { %s2100_s4 = scalar_select %p1533_p1, 1, 0 }
  0x6b   : > { %s825_s25 = sshll.u32 %s1257_s26, 3  ;;  %s826_s23 = sshll.u32 %s1261_s27, 5 }
  0x6c   : > { %s1543_s0 = scalar_select %p102_p11, %s1233_s20, %s104_s17  }
  0x6d   : > { %s271_s18 = scalar_lea.vmem [#allocation7], %s1539_s11  ;;  %s1547_s24 = sadd.s32 %s826_s23, %s825_s25 }
  0x6e   : > { %s280_s6 = sshll.u32 %s271_s18, 4  ;;  %s827_s8 = sshll.u32 %s1547_s24, 7  ;;  %s1549_s6 = int_to_ptr.vmem [resolvable:$true] %s280_s6 }
  0x6f   : > { %p2101_p13 = scmp.lt.s32.totalorder %s1265_s28, 8  ;;  %s2103_s2 = sld [smem:[#allocation28_spill]] }
  0x71   : > { %p1556_p3 = pnand %p2101_p13, %p1513_p2 }
  0x73   : > { %p1041_p7 = pneg %p1556_p3 }
  0x75   : > { %s1565_s18 = scalar_lea.hbm %s2103_s2, %s827_s8  ;;  %s1044_s25 = scalar_lea.hbm %s2103_s2, 8192 }
  0x76   : > { %s1039_s23 = scalar_lea.hbm %s1565_s18, 1024  ;;  %p1045_p8 = scmp.lt.u32.totalorder %s1565_s18, %s2103_s2 }
  0x77   : > { %p1040_p12 = scmp.ne.s32.totalorder %s1565_s18, %s1039_s23  ;;  %p1046_p2 = scmp.lt.u32.totalorder %s1044_s25, %s1039_s23 }
  0x78   : > { %p1048_p10 = scmp.lt.u32.totalorder %s1039_s23, %s1565_s18 }
  0x79   : > { %p1042_p6 = pnand %p1041_p7, %p1040_p12  ;;  %p1047_p9 = por %p1046_p2, %p1045_p8 }
  0x7b   : > { %p1043_p4 = pneg %p1042_p6  ;;  %p1049_p11 = por %p1048_p10, %p1047_p9 }
  0x7d   : > { %p1050_p13 = pnand %p1049_p11, %p1043_p4 }
  0x7f   : > { %1053 = shalt.err (!%p1050_p13)
}
  0x80   : > { %s1054_s21 = scalar_lea.vmem %s1549_s6, 1024  ;;  %s1271_s7 = smov [#allocation7]  }
  0x81   : > { %p1055_p12 = scmp.ne.s32.totalorder %s1549_s6, %s1054_s21  ;;  %s1059_s13 = sshll.u32 %s1271_s7, 4  ;;  %s1060_s13 = int_to_ptr.vmem [resolvable:$false] %s1059_s13 }
  0x82   : > { %s1061_s16 = scalar_lea.vmem %s1060_s13, 2048  ;;  %p1062_p0 = scmp.lt.s32.totalorder %s1549_s6, %s1060_s13 }
  0x83   : > { %p1057_p6 = pnand %p1055_p12, %p1041_p7  ;;  %p1063_p8 = scmp.lt.s32.totalorder %s1061_s16, %s1054_s21 }
  0x85   : > { %p1058_p1 = pneg %p1057_p6  ;;  %p1064_p2 = por %p1063_p8, %p1062_p0 }
  0x87   : > { %p1065_p9 = pnand %p1064_p2, %p1058_p1 }
  0x89   : > { %1068 = shalt.err (!%p1065_p9)
}
  0x8a   : > { %872 = dma.hbm_to_vmem [thread:$0]  (!%p1556_p3), %s1565_s18, 1024, %s1549_s6, %s1421_s30, %s2093_s10, %s2093_s10, %s2092_s5  }
  0x8b   : > { %s1601_s21 = scalar_lea.hbm %s2050_s3, %s827_s8  ;;  %s294_s17 = scalar_lea.vmem [#allocation8], %s1539_s11 }
  0x8c   : > { %s303_s7 = sshll.u32 %s294_s17, 4  ;;  %s2104_s13 = sand.u32 1, %s1233_s20   ;;  %s1604_s7 = int_to_ptr.vmem [resolvable:$true] %s303_s7 }
  0x8d   : > { %s1608_s16 = scalar_lea.sflag [#allocation9], %s2104_s13  ;;  %s1069_s2 = scalar_lea.hbm %s1601_s21, 1024 }
  0x8e   : > { %p1070_p0 = scmp.ne.s32.totalorder %s1601_s21, %s1069_s2  ;;  %s1074_s6 = scalar_lea.hbm %s2050_s3, 8192 }
  0x8f   : > { %p1075_p10 = scmp.lt.u32.totalorder %s1601_s21, %s2050_s3  ;;  %p1076_p11 = scmp.lt.u32.totalorder %s1074_s6, %s1069_s2 }
  0x90   : > { %p1072_p1 = pnand %p1070_p0, %p1041_p7  ;;  %p1078_p12 = scmp.lt.u32.totalorder %s1069_s2, %s1601_s21 }
  0x91   : > { %p1077_p13 = por %p1076_p11, %p1075_p10 }
  0x92   : > { %p1073_p4 = pneg %p1072_p1 }
  0x93   : > { %p1079_p6 = por %p1078_p12, %p1077_p13 }
  0x95   : > { %p1080_p8 = pnand %p1079_p6, %p1073_p4 }
  0x97   : > { %1083 = shalt.err (!%p1080_p8)
}
  0x98   : > { %s1084_s11 = scalar_lea.vmem %s1604_s7, 1024  ;;  %s1272_s23 = smov [#allocation8]  }
  0x99   : > { %p1085_p2 = scmp.ne.s32.totalorder %s1604_s7, %s1084_s11  ;;  %s1089_s25 = sshll.u32 %s1272_s23, 4  ;;  %s1090_s25 = int_to_ptr.vmem [resolvable:$false] %s1089_s25 }
  0x9a   : > { %s1091_s17 = scalar_lea.vmem %s1090_s25, 2048  ;;  %p1092_p1 = scmp.lt.s32.totalorder %s1604_s7, %s1090_s25 }
  0x9b   : > { %p1087_p9 = pnand %p1085_p2, %p1041_p7  ;;  %p1093_p10 = scmp.lt.s32.totalorder %s1091_s17, %s1084_s11 }
  0x9d   : > { %p1088_p0 = pneg %p1087_p9  ;;  %p1094_p11 = por %p1093_p10, %p1092_p1 }
  0x9f   : > { %p1095_p13 = pnand %p1094_p11, %p1088_p0 }
  0xa1   : > { %1098 = shalt.err (!%p1095_p13)
}
  0xa2   : > { %875 = dma.hbm_to_vmem [thread:$0]  (!%p1556_p3), %s1601_s21, 1024, %s1604_s7, %s1608_s16, %s2093_s10, %s2093_s10, %s2092_s5  }
  0xa3   : > { %p2105_p7 = scmp.ne.s32.totalorder %s2088_s12, 0 }
  0xa4   : > { %s317_s2 = sand.u32 (!%p2105_p7), 1, %s1241_s22   ;;  %p2106_p4 = scmp.ne.s32.totalorder (!%p2105_p7), %s2083_s9, 0 }
  0xa5   : > { %315 = sbr.rel (%p2105_p7) target bundleno = 388 (0x184), region = 36  ;;  %s833_s13 = sshll.u32 (!%p2105_p7), %s317_s2, 6 }
  0xa6   : > { %s318_s24 = scalar_lea.sflag (!%p2105_p7), [#allocation3], %s317_s2  ;;  %s1640_s30 = scalar_lea.vmem (!%p2105_p7), [#allocation2], %s833_s13 }
  0xac   : > { %1200 = dma.done.wait (%p2106_p4), %s318_s24, 1024  }
  0xad   : > { %1202 = vsyncadd (%p2106_p4), %s318_s24, 4294966272  ;;  %s326_s14 = sand.u32 1, %s1363_s29   ;;  %s1647_s5 = scalar_lea.vmem [#allocation5], %s833_s13 }
  0xae   : > { %s327_s6 = scalar_lea.sflag [#allocation6], %s326_s14 }
  0xaf   : > { %1204 = dma.done.wait (%p2106_p4), %s327_s6, 1024  }
  0xb0   : > { %1206 = vsyncadd (%p2106_p4), %s327_s6, 4294966272  ;;  %s1654_s12 = sand.u32 1, %s1229_s19  }
  0xb1   : > { %s1657_s10 = sshll.u32 %s1654_s12, 6 }
  0xb2   : > { %s339_s21 = scalar_lea.vmem [#allocation7], %s1657_s10 }
  0xb3   : > { %1208 = dma.done.wait (%p1519_p5), %s327_s6, 1024  }
  0xb4   : > { %1210 = vsyncadd (%p1519_p5), %s327_s6, 4294966272  ;;  %s345_s29 = scalar_lea.sflag [#allocation9], %s1654_s12  ;;  %s1666_s9 = scalar_lea.vmem [#allocation8], %s1657_s10 }
  0xb5   : > { %1212 = dma.done.wait (%p1519_p5), %s345_s29, 1024  }
  0xb6   : > { %1214 = vsyncadd (%p1519_p5), %s345_s29, 4294966272  ;;  %v1672_v0 = vld [vmem:[%s339_s21 + $0x10] sm:$0xff]  ;;  %v1674_v1 = vld [vmem:[%s339_s21] sm:$0xff]  ;;  %s1273_s7 = smov 127   ;;  %s1274_s1 = smov 1   ;;  %v417_v18 = vlaneseq }
  0xb7   : > { %433 = vrot.lane.b32.xlu1 %v1672_v0, %s1273_s7  ;;  %429 = vrot.lane.b32.xlu0 %v1674_v1, %s1273_s7  ;;  %v1680_v2 = vld [vmem:[%s339_s21 + $0x18] sm:$0xff]  ;;  %v422_v3 = vld [vmem:[%s339_s21 + $0x8] sm:$0xff]  ;;  %s2109_s16 = sld [smem:[#allocation21_spill]]  ;;  %s2110_s8 = sld [smem:[#allocation22_spill]] }
  0xb8   : > { %v1685_v4 = vld [vmem:[%s339_s21 + $0x28] sm:$0xff]  ;;  %v1687_v5 = vld [vmem:[%s339_s21 + $0x20] sm:$0xff]  ;;  %v1693_v6 = vld [vmem:[%s339_s21 + $0x38] sm:$0xff]  ;;  %v418_v21 = vand.u32 127, %v417_v18  ;;  %s1828_s18 = scalar_lea.vmem [#allocation10], %s1657_s10  ;;  %s2111_s13 = sld [smem:[#allocation25_spill]] }
  0xb9   : > { %v1695_v7 = vld [vmem:[%s339_s21 + $0x30] sm:$0xff]  ;;  %v1717_v8 = vld [vmem:[%s1666_s9 + $0x8] sm:$0xff]  ;;  %v1720_v9 = vld [vmem:[%s1666_s9] sm:$0xff]  ;;  %s602_s2 = sshll.u32 %s1828_s18, 4  ;;  %s2112_s14 = sld [smem:[#allocation29_spill]]  ;;  %s1891_s2 = int_to_ptr.vmem [resolvable:$true] %s602_s2 }
  0xba   : > { %v1727_v10 = vld [vmem:[%s1666_s9 + $0x18] sm:$0xff]  ;;  %v1730_v11 = vld [vmem:[%s1666_s9 + $0x10] sm:$0xff]  ;;  %v1737_v12 = vld [vmem:[%s1666_s9 + $0x28] sm:$0xff]  ;;  %v419_v24 = vand.u32 1, %v418_v21  ;;  %s1099_s21 = scalar_lea.vmem %s1891_s2, 1024  ;;  %s1275_s29 = smov [#allocation10]  }
  0xbb   : > { %435 = vrot.lane.b32.xlu1 %v1680_v2, %s1273_s7  ;;  %431 = vrot.lane.b32.xlu0 %v422_v3, %s1273_s7  ;;  %v1740_v13 = vld [vmem:[%s1666_s9 + $0x20] sm:$0xff]  ;;  %v1747_v14 = vld [vmem:[%s1666_s9 + $0x38] sm:$0xff]  ;;  %p1100_p5 = scmp.ne.s32.totalorder %s1891_s2, %s1099_s21 }
  0xbc   : > { %v1750_v15 = vld [vmem:[%s1666_s9 + $0x30] sm:$0xff]  ;;  %v1777_v27 = vld [vmem:[%s1640_s30] sm:$0xff]  ;;  %v1780_v28 = vld [vmem:[%s1640_s30 + $0x8] sm:$0xff]  ;;  %vm1782_vm0 = vcmp.eq.s32.totalorder %v419_v24, 0  ;;  %s1103_s9 = sshll.u32 %s1275_s29, 4  ;;  %s1104_s9 = int_to_ptr.vmem [resolvable:$false] %s1103_s9 }
  0xbd   : > { %v1787_v30 = vld [vmem:[%s1647_s5 + $0x8] sm:$0xff]  ;;  %v1790_v31 = vld [vmem:[%s1647_s5] sm:$0xff]  ;;  %v469_v32 = vmul.f32 %v1674_v1, %v1777_v27  ;;  %v470_v33 = vmul.f32 %v422_v3, %v1780_v28  ;;  %v1796_v36 = vld [vmem:[%s1640_s30 + $0x10] sm:$0xff]  ;;  %s841_s11 = sshll.u32 %s2109_s16, 3  ;;  %s842_s23 = sshll.u32 %s2110_s8, 5 }
  0xbe   : > { %v1799_v37 = vld [vmem:[%s1640_s30 + $0x18] sm:$0xff]  ;;  %v1811_v43 = vld [vmem:[%s1647_s5 + $0x10] sm:$0xff]  ;;  %v471_v44 = vmul.f32 %v1672_v0, %v1796_v36  ;;  %v1818_v50 = vld [vmem:[%s1640_s30 + $0x28] sm:$0xff]  ;;  %s1856_s25 = sadd.s32 %s842_s23, %s841_s11  ;;  %p2113_p3 = scmp.ne.s32.totalorder %s2111_s13, 0 }
  0xbf   : > { %439 = vrot.lane.b32.xlu1 %v1685_v4, %s1273_s7  ;;  %437 = vrot.lane.b32.xlu0 %v1687_v5, %s1273_s7  ;;  %v1808_v42 = vld [vmem:[%s1647_s5 + $0x18] sm:$0xff]  ;;  %v472_v45 = vmul.f32 %v1680_v2, %v1799_v37  ;;  %v1821_v51 = vld [vmem:[%s1640_s30 + $0x20] sm:$0xff]  ;;  %v474_v58 = vmul.f32 %v1685_v4, %v1818_v50  ;;  %s843_s17 = sshll.u32 %s1856_s25, 7  ;;  %p1106_p8 = scmp.lt.s32.totalorder %s1891_s2, %s1104_s9 }
  0xc0   : > { %v1837_v56 = vld [vmem:[%s1647_s5 + $0x28] sm:$0xff]  ;;  %v1840_v57 = vld [vmem:[%s1647_s5 + $0x20] sm:$0xff]  ;;  %v473_v59 = vmul.f32 %v1687_v5, %v1821_v51  ;;  %s1889_s6 = scalar_lea.hbm %s2112_s14, %s843_s17  ;;  %p1101_p12 = pnand %p1100_p5, %p2113_p3 }
  0xc2   : > { %p1102_p6 = pneg %p1101_p12 }
  0xc3   : > { %443 = vrot.lane.b32.xlu1 %v1693_v6, %s1273_s7  ;;  %441 = vrot.lane.b32.xlu0 %v1695_v7, %s1273_s7 }
  0xc7   : > { %447 = vrot.lane.b32.xlu1 %v422_v3, %s1274_s1  ;;  %445 = vrot.lane.b32.xlu0 %v1674_v1, %s1274_s1  ;;  %v1850_v1 = vld [vmem:[%s1640_s30 + $0x30] sm:$0xff] }
  0xcb   : > { %451 = vrot.lane.b32.xlu1 %v1680_v2, %s1274_s1  ;;  %449 = vrot.lane.b32.xlu0 %v1672_v0, %s1274_s1  ;;  %v1847_v0 = vld [vmem:[%s1640_s30 + $0x38] sm:$0xff] }
  0xcc   : > { %v476_v18 = vmul.f32 %v1693_v6, %v1847_v0 }
  0xcf   : > { %455 = vrot.lane.b32.xlu1 %v1685_v4, %s1274_s1  ;;  %453 = vrot.lane.b32.xlu0 %v1687_v5, %s1274_s1 }
  0xd3   : > { %459 = vrot.lane.b32.xlu1 %v1693_v6, %s1274_s1  ;;  %457 = vrot.lane.b32.xlu0 %v1695_v7, %s1274_s1 }
  0xd7   : > { %511 = vrot.lane.b32.xlu1 %v1717_v8, %s1273_s7  ;;  %509 = vrot.lane.b32.xlu0 %v1720_v9, %s1273_s7 }
  0xdb   : > { %515 = vrot.lane.b32.xlu1 %v1727_v10, %s1273_s7  ;;  %513 = vrot.lane.b32.xlu0 %v1730_v11, %s1273_s7 }
  0xdf   : > { %519 = vrot.lane.b32.xlu1 %v1737_v12, %s1273_s7  ;;  %517 = vrot.lane.b32.xlu0 %v1740_v13, %s1273_s7 }
  0xe3   : > { %523 = vrot.lane.b32.xlu1 %v1747_v14, %s1273_s7  ;;  %521 = vrot.lane.b32.xlu0 %v1750_v15, %s1273_s7  ;;  %s1105_s7 = scalar_lea.vmem %s1104_s9, 2048 }
  0xe4   : > { %p1107_p2 = scmp.lt.s32.totalorder %s1105_s7, %s1099_s21 }
  0xe6   : > { %p1108_p9 = por %p1107_p2, %p1106_p8 }
  0xe7   : > { %527 = vrot.lane.b32.xlu1 %v1717_v8, %s1274_s1  ;;  %525 = vrot.lane.b32.xlu0 %v1720_v9, %s1274_s1 }
  0xe8   : > { %p1109_p0 = pnand %p1108_p9, %p1102_p6 }
  0xeb   : > { %531 = vrot.lane.b32.xlu1 %v1727_v10, %s1274_s1  ;;  %529 = vrot.lane.b32.xlu0 %v1730_v11, %s1274_s1 }
  0xef   : > { %535 = vrot.lane.b32.xlu1 %v1737_v12, %s1274_s1  ;;  %533 = vrot.lane.b32.xlu0 %v1740_v13, %s1274_s1 }
  0xf3   : > { %539 = vrot.lane.b32.xlu1 %v1747_v14, %s1274_s1  ;;  %537 = vrot.lane.b32.xlu0 %v1750_v15, %s1274_s1 }
 0x129   : > { %v434_v16 = vpop.permute.xlu1 %433  ;;  %v430_v17 = vpop.permute.xlu0 %429 }
 0x12d   : > { %v436_v19 = vpop.permute.xlu1 %435  ;;  %v432_v20 = vpop.permute.xlu0 %431 }
 0x131   : > { %v440_v22 = vpop.permute.xlu1 %439  ;;  %v438_v23 = vpop.permute.xlu0 %437 }
 0x135   : > { %v1772_v25 = vpop.permute.xlu1 %443  ;;  %v1774_v26 = vpop.permute.xlu0 %441 }
 0x139   : > { %v448_v34 = vpop.permute.xlu1 %447  ;;  %v446_v35 = vpop.permute.xlu0 %445 }
 0x13a   : > { %v462_v38 = vsel %vm1782_vm0, %v432_v20, %v448_v34  ;;  %v461_v39 = vsel %vm1782_vm0, %v430_v17, %v446_v35  ;;  %v1866_v17 = vld [vmem:[%s1647_s5 + $0x30] sm:$0xff] }
 0x13b   : > { %v478_v40 = vmul.f32 %v462_v38, %v1787_v30  ;;  %v477_v41 = vmul.f32 %v461_v39, %v1790_v31 }
 0x13d   : > { %v486_v46 = vadd.f32 %v478_v40, %v470_v33  ;;  %v485_v47 = vadd.f32 %v477_v41, %v469_v32  ;;  %v452_v48 = vpop.permute.xlu1 %451  ;;  %v450_v49 = vpop.permute.xlu0 %449 }
 0x13e   : > { %v464_v52 = vsel %vm1782_vm0, %v436_v19, %v452_v48  ;;  %v463_v53 = vsel %vm1782_vm0, %v434_v16, %v450_v49  ;;  %v1863_v16 = vld [vmem:[%s1647_s5 + $0x38] sm:$0xff]  ;;  %v475_v19 = vmul.f32 %v1695_v7, %v1850_v1  ;;  %s582_s5 = scalar_lea.sflag [#allocation4], %s1654_s12 }
 0x13f   : > { %494 = vst [vmem:[%s1828_s18 + $0x8] sm:$0xff] %v486_v46  ;;  %493 = vst [vmem:[%s1828_s18] sm:$0xff] %v485_v47  ;;  %v480_v54 = vmul.f32 %v464_v52, %v1808_v42  ;;  %v479_v55 = vmul.f32 %v463_v53, %v1811_v43 }
 0x141   : > { %v488_v60 = vadd.f32 %v480_v54, %v472_v45  ;;  %v487_v61 = vadd.f32 %v479_v55, %v471_v44  ;;  %v456_v62 = vpop.permute.xlu1 %455  ;;  %v454_v63 = vpop.permute.xlu0 %453 }
 0x142   : > { %v466_v2 = vsel %vm1782_vm0, %v440_v22, %v456_v62  ;;  %v465_v3 = vsel %vm1782_vm0, %v438_v23, %v454_v63 }
 0x143   : > { %496 = vst [vmem:[%s1828_s18 + $0x18] sm:$0xff] %v488_v60  ;;  %495 = vst [vmem:[%s1828_s18 + $0x10] sm:$0xff] %v487_v61  ;;  %v482_v4 = vmul.f32 %v466_v2, %v1837_v56  ;;  %v481_v5 = vmul.f32 %v465_v3, %v1840_v57 }
 0x145   : > { %v490_v20 = vadd.f32 %v482_v4, %v474_v58  ;;  %v489_v21 = vadd.f32 %v481_v5, %v473_v59  ;;  %v460_v22 = vpop.permute.xlu1 %459  ;;  %v458_v23 = vpop.permute.xlu0 %457 }
 0x146   : > { %v468_v24 = vsel %vm1782_vm0, %v1772_v25, %v460_v22  ;;  %v467_v6 = vsel %vm1782_vm0, %v1774_v26, %v458_v23 }
 0x147   : > { %498 = vst [vmem:[%s1828_s18 + $0x28] sm:$0xff] %v490_v20  ;;  %497 = vst [vmem:[%s1828_s18 + $0x20] sm:$0xff] %v489_v21  ;;  %v484_v7 = vmul.f32 %v468_v24, %v1863_v16  ;;  %v483_v32 = vmul.f32 %v467_v6, %v1866_v17 }
 0x149   : > { %v492_v25 = vadd.f32 %v484_v7, %v476_v18  ;;  %v491_v26 = vadd.f32 %v483_v32, %v475_v19  ;;  %v512_v33 = vpop.permute.xlu1 %511  ;;  %v510_v34 = vpop.permute.xlu0 %509 }
 0x14b   : > { %500 = vst [vmem:[%s1828_s18 + $0x38] sm:$0xff] %v492_v25  ;;  %499 = vst [vmem:[%s1828_s18 + $0x30] sm:$0xff] %v491_v26 }
 0x14c   : > { %1112 = shalt.err (!%p1109_p0)
}
 0x14d   : > { %s1113_s1 = scalar_lea.hbm %s1889_s6, 1024  ;;  %s1117_s18 = scalar_lea.hbm %s2112_s14, 8192 }
 0x14e   : > { %p1114_p1 = scmp.ne.s32.totalorder %s1889_s6, %s1113_s1  ;;  %p1118_p13 = scmp.lt.u32.totalorder %s1889_s6, %s2112_s14 }
 0x14f   : > { %p1119_p7 = scmp.lt.u32.totalorder %s1117_s18, %s1113_s1  ;;  %p1121_p5 = scmp.lt.u32.totalorder %s1113_s1, %s1889_s6 }
 0x150   : > { %p1115_p10 = pnand %p1114_p1, %p2113_p3 }
 0x151   : > { %p1120_p4 = por %p1119_p7, %p1118_p13 }
 0x152   : > { %p1116_p11 = pneg %p1115_p10 }
 0x153   : > { %p1122_p12 = por %p1121_p5, %p1120_p4 }
 0x155   : > { %p1123_p6 = pnand %p1122_p12, %p1116_p11 }
 0x157   : > { %1126 = shalt.err (!%p1123_p6)
}
 0x158   : > { %s1276_s24 = smov 128   ;;  %s1277_s30 = smov 8   ;;  %v516_v35 = vpop.permute.xlu1 %515  ;;  %v514_v38 = vpop.permute.xlu0 %513  ;;  %v550_v45 = vmul.f32 %v1717_v8, %v1780_v28  ;;  %v549_v46 = vmul.f32 %v1720_v9, %v1777_v27  ;;  %v552_v55 = vmul.f32 %v1727_v10, %v1799_v37  ;;  %v551_v8 = vmul.f32 %v1730_v11, %v1796_v36 }
 0x159   : > { %859 = dma.vmem_to_hbm [thread:$0]  (%p2113_p3), %s1891_s2, 1024, %s1889_s6, %s582_s5, %s1276_s24, %s1276_s24, %s1277_s30  }
 0x15a   : > { %s1941_s2 = scalar_lea.vmem [#allocation11], %s1657_s10  ;;  %s2114_s21 = sld [smem:[#allocation30_spill]] }
 0x15b   : > { %s620_s10 = sshll.u32 %s1941_s2, 4  ;;  %s587_s7 = scalar_lea.sflag [#allocation12], %s1654_s12  ;;  %s1979_s10 = int_to_ptr.vmem [resolvable:$true] %s620_s10 }
 0x15c   : > { %v520_v39 = vpop.permute.xlu1 %519  ;;  %v518_v40 = vpop.permute.xlu0 %517  ;;  %s1127_s1 = scalar_lea.vmem %s1979_s10, 1024  ;;  %s1278_s16 = smov [#allocation11]  }
 0x15d   : > { %p1128_p8 = scmp.ne.s32.totalorder %s1979_s10, %s1127_s1  ;;  %s1131_s25 = sshll.u32 %s1278_s16, 4  ;;  %s1132_s25 = int_to_ptr.vmem [resolvable:$false] %s1131_s25 }
 0x15e   : > { %s1133_s8 = scalar_lea.vmem %s1132_s25, 2048  ;;  %p1134_p0 = scmp.lt.s32.totalorder %s1979_s10, %s1132_s25 }
 0x15f   : > { %p1129_p2 = pnand %p1128_p8, %p2113_p3  ;;  %p1135_p1 = scmp.lt.s32.totalorder %s1133_s8, %s1127_s1 }
 0x160   : > { %v524_v41 = vpop.permute.xlu1 %523  ;;  %v522_v44 = vpop.permute.xlu0 %521  ;;  %s2115_s29 = smov %s2114_s21  ;;  %s1977_s9 = scalar_lea.hbm %s2114_s21, %s843_s17 }
 0x161   : > { %p1130_p9 = pneg %p1129_p2  ;;  %p1136_p10 = por %p1135_p1, %p1134_p0 }
 0x163   : > { %p1137_p11 = pnand %p1136_p10, %p1130_p9 }
 0x164   : > { %v528_v47 = vpop.permute.xlu1 %527  ;;  %v526_v48 = vpop.permute.xlu0 %525 }
 0x165   : > { %v542_v49 = vsel %vm1782_vm0, %v512_v33, %v528_v47  ;;  %v541_v52 = vsel %vm1782_vm0, %v510_v34, %v526_v48 }
 0x166   : > { %v558_v53 = vmul.f32 %v542_v49, %v1787_v30  ;;  %v557_v54 = vmul.f32 %v541_v52, %v1790_v31  ;;  %v554_v30 = vmul.f32 %v1737_v12, %v1818_v50  ;;  %v553_v31 = vmul.f32 %v1740_v13, %v1821_v51 }
 0x167   : > { %v556_v13 = vmul.f32 %v1747_v14, %v1847_v0  ;;  %v555_v50 = vmul.f32 %v1750_v15, %v1850_v1 }
 0x168   : > { %v566_v28 = vadd.f32 %v558_v53, %v550_v45  ;;  %v565_v9 = vadd.f32 %v557_v54, %v549_v46  ;;  %v532_v27 = vpop.permute.xlu1 %531  ;;  %v530_v58 = vpop.permute.xlu0 %529 }
 0x169   : > { %v544_v59 = vsel %vm1782_vm0, %v516_v35, %v532_v27  ;;  %v543_v60 = vsel %vm1782_vm0, %v514_v38, %v530_v58 }
 0x16a   : > { %574 = vst [vmem:[%s1941_s2 + $0x8] sm:$0xff] %v566_v28  ;;  %573 = vst [vmem:[%s1941_s2] sm:$0xff] %v565_v9  ;;  %v560_v10 = vmul.f32 %v544_v59, %v1808_v42  ;;  %v559_v11 = vmul.f32 %v543_v60, %v1811_v43 }
 0x16c   : > { %v568_v36 = vadd.f32 %v560_v10, %v552_v55  ;;  %v567_v37 = vadd.f32 %v559_v11, %v551_v8  ;;  %v536_v61 = vpop.permute.xlu1 %535  ;;  %v534_v62 = vpop.permute.xlu0 %533 }
 0x16d   : > { %v546_v63 = vsel %vm1782_vm0, %v520_v39, %v536_v61  ;;  %v545_v42 = vsel %vm1782_vm0, %v518_v40, %v534_v62 }
 0x16e   : > { %576 = vst [vmem:[%s1941_s2 + $0x18] sm:$0xff] %v568_v36  ;;  %575 = vst [vmem:[%s1941_s2 + $0x10] sm:$0xff] %v567_v37  ;;  %v562_v12 = vmul.f32 %v546_v63, %v1837_v56  ;;  %v561_v43 = vmul.f32 %v545_v42, %v1840_v57 }
 0x170   : > { %v570_v51 = vadd.f32 %v562_v12, %v554_v30  ;;  %v569_v2 = vadd.f32 %v561_v43, %v553_v31  ;;  %v540_v3 = vpop.permute.xlu1 %539  ;;  %v538_v4 = vpop.permute.xlu0 %537 }
 0x171   : > { %v548_v5 = vsel %vm1782_vm0, %v524_v41, %v540_v3  ;;  %v547_v56 = vsel %vm1782_vm0, %v522_v44, %v538_v4 }
 0x172   : > { %578 = vst [vmem:[%s1941_s2 + $0x28] sm:$0xff] %v570_v51  ;;  %577 = vst [vmem:[%s1941_s2 + $0x20] sm:$0xff] %v569_v2  ;;  %v564_v14 = vmul.f32 %v548_v5, %v1863_v16  ;;  %v563_v15 = vmul.f32 %v547_v56, %v1866_v17 }
 0x174   : > { %v572_v57 = vadd.f32 %v564_v14, %v556_v13  ;;  %v571_v0 = vadd.f32 %v563_v15, %v555_v50 }
 0x176   : > { %580 = vst [vmem:[%s1941_s2 + $0x38] sm:$0xff] %v572_v57  ;;  %579 = vst [vmem:[%s1941_s2 + $0x30] sm:$0xff] %v571_v0 }
 0x177   : > { %1140 = shalt.err (!%p1137_p11)
}
 0x178   : > { %s1141_s17 = scalar_lea.hbm %s1977_s9, 1024  ;;  %s1145_s23 = scalar_lea.hbm %s2115_s29, 8192 }
 0x179   : > { %p1142_p13 = scmp.ne.s32.totalorder %s1977_s9, %s1141_s17  ;;  %p1146_p5 = scmp.lt.u32.totalorder %s1977_s9, %s2115_s29 }
 0x17a   : > { %p1147_p12 = scmp.lt.u32.totalorder %s1145_s23, %s1141_s17  ;;  %p1149_p8 = scmp.lt.u32.totalorder %s1141_s17, %s1977_s9 }
 0x17b   : > { %p1143_p7 = pnand %p1142_p13, %p2113_p3 }
 0x17c   : > { %p1148_p6 = por %p1147_p12, %p1146_p5 }
 0x17d   : > { %p1144_p4 = pneg %p1143_p7 }
 0x17e   : > { %p1150_p2 = por %p1149_p8, %p1148_p6 }
 0x180   : > { %p1151_p9 = pnand %p1150_p2, %p1144_p4 }
 0x182   : > { %1154 = shalt.err (!%p1151_p9)
}
 0x183   : > { %860 = dma.vmem_to_hbm [thread:$0]  (%p2113_p3), %s1979_s10, 1024, %s1977_s9, %s587_s7, %s1276_s24, %s1276_s24, %s1277_s30  }
 0x184 PF: > { %s2116_s5 = sld [smem:[#allocation19_spill]]  ;;  %p884_p0 = scmp.ge.s32.totalorder %s1265_s28, 2 }
 0x185   : > { %p2117_p1 = scmp.ne.s32.totalorder %s2100_s4, 0 }
 0x187   : > { %p877_p10 = pnand %p884_p0, %p2117_p1 }
 0x18a   : > { %s635_s21 = sand.u32 1, %s2116_s5  }
 0x18b   : > { %s636_s1 = scalar_lea.sflag [#allocation4], %s635_s21 }
 0x18c   : > { %1216 = dma.done.wait (!%p877_p10), %s636_s1, 1024  }
 0x18d   : > { %1218 = vsyncadd (!%p877_p10), %s636_s1, 4294966272  ;;  %s645_s13 = scalar_lea.sflag [#allocation12], %s635_s21 }
 0x18e   : > { %1220 = dma.done.wait (!%p877_p10), %s645_s13, 1024  }
 0x18f   : > { %1222 = vsyncadd (!%p877_p10), %s645_s13, 4294966272  ;;  %s31_s28 = sadd.s32 1, %s1265_s28   ;;  %s2118_s12 = sld [smem:[#allocation20_spill]] }
 0x190   : > { %p28_p11 = scmp.ge.s32.totalorder %s31_s28, 10   ;;  %s2119_s23 = sld [smem:[#allocation24_spill]] }
 0x191   : > { %s2120_s30 = sld [smem:[#allocation23_spill]]  ;;  %s2121_s18 = smov %s1229_s19 }
 0x192   : > { %s2122_s19 = smov %s1233_s20  ;;  %s2123_s20 = smov %s1543_s0 }
 0x193   : > { %s2124_s21 = smov %s1241_s22  ;;  %s2126_s24 = smov %s1257_s26 }
 0x194   : > { %s2127_s25 = smov %s1261_s27  ;;  %s2129_s27 = smov %s2135_s15 }
 0x195   : > { %s2125_s22 = smov %s2118_s12  ;;  %30 = sbr.rel (!%p28_p11) target bundleno = 21 (0x15), region = 135 }
 0x197   : > { %s2128_s26 = smov %s2120_s30 }
 0x19c   :  { %650 = vsyncpa [#allocation3], 1 }
 0x19d   :  { %652 = vsyncpa [#allocation3 + $0x1], 1 }
 0x19e   :  { %653 = vsyncpa [#allocation6], 1 }
 0x19f   :  { %655 = vsyncpa [#allocation6 + $0x1], 1 }
 0x1a0   :  { %656 = vsyncpa [#allocation9], 1 }
 0x1a1   :  { %658 = vsyncpa [#allocation9 + $0x1], 1 }
 0x1a2   :  { %659 = vsyncpa [#allocation4], 1 }
 0x1a3   :  { %661 = vsyncpa [#allocation4 + $0x1], 1 }
 0x1a4   :  { %662 = vsyncpa [#allocation12], 1 }
 0x1a5   :  { %664 = vsyncpa [#allocation12 + $0x1], 1 }

</bundles_post_ra>
